<compile_context>
chip_gen: v7x
topology: tpu7x:2x2x1
jax: 0.10.0
libtpu: 0.0.40
codegen_flags: <defaults>
</compile_context>

<pallas_src>
import functools
import math

import jax
import jax.numpy as jnp
from jax.experimental import pallas as pl
from jax.experimental.pallas import tpu as pltpu


_MIN_TILES = 4                       # target >= 4 grid steps on large inputs
_VMEM_LIMIT_BYTES = 32 * 1024 * 1024  # <= physical VMEM on v5e/v6e (128 MiB) and v7x (64 MiB)


def _round_up(x: int, m: int) -> int:
    return ((x + m - 1) // m) * m


def _distance_decoder_kernel(z_ref, h_ref, wz_ref, wh_ref, b_ref, o_ref, *, G, H):
    # z_ref, h_ref  : (tm, G*H)  VMEM row tiles (G original rows folded per row)
    # wz_ref, wh_ref: (1, G*H)   resident lane-dense weight rows (f32)
    # b_ref         : (1,)       SMEM scalar bias (f32)
    # o_ref         : (tm, G)    VMEM output tile (f32)
    prod = (z_ref[...].astype(jnp.float32) * wz_ref[...]
            + h_ref[...].astype(jnp.float32) * wh_ref[...])          # VPU, exact f32
    b = b_ref[0]
    for g in range(G):                                               # small static unroll
        seg = prod[:, g * H:(g + 1) * H]                             # (tm, H) lane segment
        o_ref[:, g:g + 1] = jnp.sum(seg, axis=-1, keepdims=True) + b  # XLU lane reduce


@functools.partial(jax.jit, static_argnames=("tm_cap", "vmem_budget_mib"))
def bf_distance_decoder(z, h, weight, bias, *, tm_cap=None, vmem_budget_mib=12):
    """z, h: (..., H); weight: (1, 2H) torch nn.Linear layout; bias: (1,)."""
    lead = z.shape[:-1]
    H = z.shape[-1]
    zf = z.reshape(-1, H)
    hf = h.reshape(-1, H)
    M = zf.shape[0]

    # ---- Lane fold: pack G original rows into one (G*H)-lane row.  The reshape
    # is free (contiguous) and copy-free because G divides M by construction. ----
    g_max = 128 // H if (H < 128 and 128 % H == 0) else 1
    G = math.gcd(M, g_max)
    W = G * H
    Mg = M // G
    zf = zf.reshape(Mg, W)
    hf = hf.reshape(Mg, W)

    # Weights as tiny resident lane-dense rows; bias as an SMEM scalar.
    wz = jnp.tile(weight[:, :H].astype(jnp.float32), (1, G))         # (1, W)
    wh = jnp.tile(weight[:, H:].astype(jnp.float32), (1, G))         # (1, W)
    b = bias.reshape(1).astype(jnp.float32)                          # (1,)

    # ---- Row-tile size from an explicit VMEM budget, using lane-PADDED widths. ----
    itemsize = zf.dtype.itemsize
    sub = max(8, 32 // itemsize)                  # sublane multiple: 8 f32 / 16 bf16 / 32 i8
    w_pad = _round_up(W, 128)
    bytes_per_row = (2 * 2 * w_pad * itemsize     # z + h tiles, double-buffered
                     + 2 * _round_up(G, 128) * 4)  # output tiles, double-buffered (lane-padded)
    budget = vmem_budget_mib * (1 << 20)
    tm = max(sub, budget // bytes_per_row // sub * sub)
    # Guarantee >= _MIN_TILES grid steps on large inputs (pipeline depth + v7x 2-TC split).
    tm = min(tm, _round_up(max(-(-Mg // _MIN_TILES), 1), sub))
    if tm_cap is not None:
        tm = min(tm, max(sub, tm_cap // sub * sub))
    if tm >= Mg:
        tm = Mg                                   # single full-extent block (always legal)
    n_tiles = pl.cdiv(Mg, tm)                     # ragged last block is masked by Pallas

    kernel = functools.partial(_distance_decoder_kernel, G=G, H=H)
    out = pl.pallas_call(
        kernel,
        out_shape=jax.ShapeDtypeStruct((Mg, G), jnp.float32),
        grid_spec=pl.GridSpec(
            grid=(n_tiles,),
            in_specs=[
                pl.BlockSpec((tm, W), lambda i: (i, 0)),              # z rows
                pl.BlockSpec((tm, W), lambda i: (i, 0)),              # h rows
                pl.BlockSpec((1, W), lambda i: (0, 0)),               # w_z (resident)
                pl.BlockSpec((1, W), lambda i: (0, 0)),               # w_h (resident)
                pl.BlockSpec(memory_space=pltpu.MemorySpace.SMEM),    # bias scalar
            ],
            out_specs=pl.BlockSpec((tm, G), lambda i: (i, 0)),
        ),
        compiler_params=pltpu.CompilerParams(
            dimension_semantics=("parallel",),
            vmem_limit_bytes=_VMEM_LIMIT_BYTES,
        ),
    )(zf, hf, wz, wh, b)

    # (Mg, G) row-major is exactly the original row order; fold back (no pad to strip).
    return out.reshape(*lead, 1)


def _reference(z, h, weight, bias):
    zh = jnp.concatenate([z, h], axis=-1)
    return jnp.dot(zh, weight.T, precision=jax.lax.Precision.HIGHEST) + bias


if __name__ == "__main__":
    key = jax.random.PRNGKey(0)
    kz, kh, kw, kb, kz2, kh2 = jax.random.split(key, 6)

    # Small shape consistent with the module: batch=2, seq=8, hidden=32.
    B, S, H = 2, 8, 32
    z = jax.random.normal(kz, (B, S, H), dtype=jnp.float32)
    h = jax.random.normal(kh, (B, S, H), dtype=jnp.float32)

    # Deterministic init for nn.Linear(2H, 1): weight (1, 2H), bias (1,)
    bound = 1.0 / math.sqrt(2.0 * H)
    weight = jax.random.uniform(kw, (1, 2 * H), minval=-bound, maxval=bound,
                                dtype=jnp.float32)
    bias = jax.random.uniform(kb, (1,), minval=-bound, maxval=bound,
                              dtype=jnp.float32)

    out = jax.block_until_ready(bf_distance_decoder(z, h, weight, bias))
    ref = _reference(z, h, weight, bias)
    assert out.shape == (B, S, 1), out.shape
    assert jnp.allclose(out, ref, atol=1e-5, rtol=1e-5), "mismatch vs reference"

    # Check 2: ragged row count (M = 150 -> lane fold degrades gracefully to G=2,
    # still copy-free) plus a small tile cap so the grid has several steps and a
    # Pallas-masked ragged last block.
    B2, S2 = 3, 50
    z2 = jax.random.normal(kz2, (B2, S2, H), dtype=jnp.float32)
    h2 = jax.random.normal(kh2, (B2, S2, H), dtype=jnp.float32)
    out2 = jax.block_until_ready(bf_distance_decoder(z2, h2, weight, bias, tm_cap=32))
    ref2 = _reference(z2, h2, weight, bias)
    assert out2.shape == (B2, S2, 1), out2.shape
    assert jnp.allclose(out2, ref2, atol=1e-5, rtol=1e-5), "mismatch vs reference (ragged)"

    # Check 3: bf16 activations end-to-end (halves the dominant HBM read); the
    # kernel upcasts in registers and accumulates in f32, so it matches the f32
    # reference evaluated on the same bf16-rounded inputs.
    z3 = z.astype(jnp.bfloat16)
    h3 = h.astype(jnp.bfloat16)
    out3 = jax.block_until_ready(bf_distance_decoder(z3, h3, weight, bias))
    ref3 = _reference(z3.astype(jnp.float32), h3.astype(jnp.float32), weight, bias)
    assert out3.shape == (B, S, 1), out3.shape
    assert jnp.allclose(out3, ref3, atol=1e-5, rtol=1e-5), "mismatch vs reference (bf16)"

    print("KERNEL_OK")
</pallas_src>

<mosaic_0001>
module attributes {stable_mosaic.version = 11 : i64} {
  func.func @_distance_decoder_kernel(%arg0: i32, %arg1: memref<4x128xf32, #tpu.memory_space<vmem>>, %arg2: memref<4x128xf32, #tpu.memory_space<vmem>>, %arg3: memref<1x128xf32, #tpu.memory_space<vmem>>, %arg4: memref<1x128xf32, #tpu.memory_space<vmem>>, %arg5: memref<1xf32, #tpu.memory_space<smem>>, %arg6: memref<4x4xf32, #tpu.memory_space<vmem>>) attributes {dimension_semantics = [#tpu.dimension_semantics<parallel>], iteration_bounds = array<i64: 1>, scalar_prefetch = 0 : i64, scratch_operands = 0 : i64, tpu.core_type = #tpu.core_type<tc>, window_params = [{transform_indices = @transform_0, window_bounds = array<i64: 4, 128>}, {transform_indices = @transform_1, window_bounds = array<i64: 4, 128>}, {pipeline_mode = #tpu.pipeline_mode<synchronous>, transform_indices = @transform_2, window_bounds = array<i64: 1, 128>}, {pipeline_mode = #tpu.pipeline_mode<synchronous>, transform_indices = @transform_3, window_bounds = array<i64: 1, 128>}, {transform_indices = @transform_4, window_bounds = array<i64: 1>}, {transform_indices = @transform_5, window_bounds = array<i64: 4, 4>}]} {
    %c0 = arith.constant 0 : index
    %c0_0 = arith.constant 0 : index
    %0 = vector.load %arg1[%c0, %c0_0] : memref<4x128xf32, #tpu.memory_space<vmem>>, vector<4x128xf32>
    %c0_1 = arith.constant 0 : index
    %c0_2 = arith.constant 0 : index
    %1 = vector.load %arg3[%c0_1, %c0_2] : memref<1x128xf32, #tpu.memory_space<vmem>>, vector<1x128xf32>
    %2 = vector.broadcast %1 : vector<1x128xf32> to vector<4x128xf32>
    %3 = arith.mulf %0, %2 : vector<4x128xf32>
    %c0_3 = arith.constant 0 : index
    %c0_4 = arith.constant 0 : index
    %4 = vector.load %arg2[%c0_3, %c0_4] : memref<4x128xf32, #tpu.memory_space<vmem>>, vector<4x128xf32>
    %c0_5 = arith.constant 0 : index
    %c0_6 = arith.constant 0 : index
    %5 = vector.load %arg4[%c0_5, %c0_6] : memref<1x128xf32, #tpu.memory_space<vmem>>, vector<1x128xf32>
    %6 = vector.broadcast %5 : vector<1x128xf32> to vector<4x128xf32>
    %7 = arith.mulf %4, %6 : vector<4x128xf32>
    %8 = arith.addf %3, %7 : vector<4x128xf32>
    %c0_7 = arith.constant 0 : index
    %9 = memref.load %arg5[%c0_7] : memref<1xf32, #tpu.memory_space<smem>>
    %10 = vector.extract_strided_slice %8 {offsets = [0, 0], sizes = [4, 32], strides = [1, 1]} : vector<4x128xf32> to vector<4x32xf32>
    %cst = arith.constant dense<0.000000e+00> : vector<4xf32>
    %11 = vector.multi_reduction <add>, %10, %cst [1] : vector<4x32xf32> to vector<4xf32>
    %12 = vector.shape_cast %11 : vector<4xf32> to vector<4x1xf32>
    %13 = vector.broadcast %9 : f32 to vector<4x1xf32>
    %14 = arith.addf %12, %13 : vector<4x1xf32>
    %c0_8 = arith.constant 0 : index
    %c0_9 = arith.constant 0 : index
    %15 = vector.load %arg6[%c0_8, %c0_9] : memref<4x4xf32, #tpu.memory_space<vmem>>, vector<4x1xf32>
    tpu.vector_store %arg6[%c0_8, %c0_9], %14 {strides = array<i32>} : memref<4x4xf32, #tpu.memory_space<vmem>>, vector<4x1xf32>,
    %16 = vector.extract_strided_slice %8 {offsets = [0, 32], sizes = [4, 32], strides = [1, 1]} : vector<4x128xf32> to vector<4x32xf32>
    %cst_10 = arith.constant dense<0.000000e+00> : vector<4xf32>
    %17 = vector.multi_reduction <add>, %16, %cst_10 [1] : vector<4x32xf32> to vector<4xf32>
    %18 = vector.shape_cast %17 : vector<4xf32> to vector<4x1xf32>
    %19 = vector.broadcast %9 : f32 to vector<4x1xf32>
    %20 = arith.addf %18, %19 : vector<4x1xf32>
    %c0_11 = arith.constant 0 : index
    %c1 = arith.constant 1 : index
    %21 = vector.load %arg6[%c0_11, %c1] : memref<4x4xf32, #tpu.memory_space<vmem>>, vector<4x1xf32>
    tpu.vector_store %arg6[%c0_11, %c1], %20 {strides = array<i32>} : memref<4x4xf32, #tpu.memory_space<vmem>>, vector<4x1xf32>,
    %22 = vector.extract_strided_slice %8 {offsets = [0, 64], sizes = [4, 32], strides = [1, 1]} : vector<4x128xf32> to vector<4x32xf32>
    %cst_12 = arith.constant dense<0.000000e+00> : vector<4xf32>
    %23 = vector.multi_reduction <add>, %22, %cst_12 [1] : vector<4x32xf32> to vector<4xf32>
    %24 = vector.shape_cast %23 : vector<4xf32> to vector<4x1xf32>
    %25 = vector.broadcast %9 : f32 to vector<4x1xf32>
    %26 = arith.addf %24, %25 : vector<4x1xf32>
    %c0_13 = arith.constant 0 : index
    %c2 = arith.constant 2 : index
    %27 = vector.load %arg6[%c0_13, %c2] : memref<4x4xf32, #tpu.memory_space<vmem>>, vector<4x1xf32>
    tpu.vector_store %arg6[%c0_13, %c2], %26 {strides = array<i32>} : memref<4x4xf32, #tpu.memory_space<vmem>>, vector<4x1xf32>,
    %28 = vector.extract_strided_slice %8 {offsets = [0, 96], sizes = [4, 32], strides = [1, 1]} : vector<4x128xf32> to vector<4x32xf32>
    %cst_14 = arith.constant dense<0.000000e+00> : vector<4xf32>
    %29 = vector.multi_reduction <add>, %28, %cst_14 [1] : vector<4x32xf32> to vector<4xf32>
    %30 = vector.shape_cast %29 : vector<4xf32> to vector<4x1xf32>
    %31 = vector.broadcast %9 : f32 to vector<4x1xf32>
    %32 = arith.addf %30, %31 : vector<4x1xf32>
    %c0_15 = arith.constant 0 : index
    %c3 = arith.constant 3 : index
    %33 = vector.load %arg6[%c0_15, %c3] : memref<4x4xf32, #tpu.memory_space<vmem>>, vector<4x1xf32>
    tpu.vector_store %arg6[%c0_15, %c3], %32 {strides = array<i32>} : memref<4x4xf32, #tpu.memory_space<vmem>>, vector<4x1xf32>,
    return
  }
  func.func @transform_0(%arg0: i32) -> (i32, i32) {
    %c0_i32 = arith.constant 0 : i32
    %c0_i32_0 = arith.constant 0 : i32
    return %arg0, %c0_i32 : i32, i32
  }
  func.func @transform_1(%arg0: i32) -> (i32, i32) {
    %c0_i32 = arith.constant 0 : i32
    %c0_i32_0 = arith.constant 0 : i32
    return %arg0, %c0_i32 : i32, i32
  }
  func.func @transform_2(%arg0: i32) -> (i32, i32) {
    %c0_i32 = arith.constant 0 : i32
    %c0_i32_0 = arith.constant 0 : i32
    %c0_i32_1 = arith.constant 0 : i32
    return %c0_i32, %c0_i32_0 : i32, i32
  }
  func.func @transform_3(%arg0: i32) -> (i32, i32) {
    %c0_i32 = arith.constant 0 : i32
    %c0_i32_0 = arith.constant 0 : i32
    %c0_i32_1 = arith.constant 0 : i32
    return %c0_i32, %c0_i32_0 : i32, i32
  }
  func.func @transform_4(%arg0: i32) -> i32 {
    %c0_i32 = arith.constant 0 : i32
    %c0_i32_0 = arith.constant 0 : i32
    return %c0_i32 : i32
  }
  func.func @transform_5(%arg0: i32) -> (i32, i32) {
    %c0_i32 = arith.constant 0 : i32
    %c0_i32_0 = arith.constant 0 : i32
    return %arg0, %c0_i32 : i32, i32
  }
}

</mosaic_0001>

<bundles_post_ra>
// kernel: bf_distance_decoder.1
= control target key start
LH: loop header
LB: loop body
LE: loop exit
PB: predicated region body
PF: predicated region fallthrough
CT: control target
= control target key end

     0   :  { %s86_s26 = smov 96   ;;  %s87_s27 = smov 32   ;;  %vm41_vm0 = vcmask 257024   ;;  %vm47_vm1 = vcmask 3072   ;;  %vm57_vm2 = vcmask 11272   ;;  %vm66_vm3 = vcmask 19472   ;;  %s146_s0 = inlined_call_operand.vmem [shape: f32[4,128], index: 0, kind: input, shape index: {}]   ;;  %s147_s1 = inlined_call_operand.vmem [shape: f32[4,128], index: 1, kind: input, shape index: {}]   ;;  %s148_s2 = inlined_call_operand.vmem [shape: f32[1,128], index: 2, kind: input, shape index: {}]   ;;  %s149_s3 = inlined_call_operand.vmem [shape: f32[1,128], index: 3, kind: input, shape index: {}]   ;;  %s150_s4 = inlined_call_operand.<no memory space> [shape: f32[1], index: 4, kind: input, shape index: {}]   ;;  %s151_s5 = inlined_call_operand.vmem [shape: f32[4,4], index: 5, kind: output, shape index: {}]  }
   0x1   :  { %v21_v0 = vld [vmem:[%s146_s0] sm:$0xf]  ;;  %s88_s0 = smov 64   ;;  %v45_v14 = vstv %s150_s4  ;;  %vm75_vm4 = vcmask 27672  }
   0x2   :  { %v81_v1 = vld [vmem:[%s148_s2] ss:$0 sm:$0xff] }
   0x3   :  { %v30_v2 = vld [vmem:[%s147_s1] sm:$0xf]  ;;  %v29_v3 = vmul.f32 %v81_v1, %v21_v0 }
   0x4   :  { %v82_v4 = vld [vmem:[%s149_s3] ss:$0 sm:$0xff] }
   0x5   :  { %v38_v5 = vmul.f32 %v82_v4, %v30_v2 }
   0x7   :  { %v39_v6 = vadd.f32 %v38_v5, %v29_v3 }
   0x9   :  { %50 = vrot.lane.b32.xlu0 %v39_v6, %s86_s26  ;;  %68 = vrot.lane.b32.xlu1 %v39_v6, %s87_s27  ;;  %v42_v7 = vsel %vm41_vm0, %v39_v6, 0.0 }
   0xd   :  { %59 = vrot.lane.b32.xlu0 %v39_v6, %s88_s0 }
  0x2d   :  { %43 = vadd.xlane.f32.xlu1 %v42_v7 }
  0x7b   :  { %v51_v8 = vpop.permute.xlu0 %50  ;;  %v69_v9 = vpop.permute.xlu1 %68 }
  0x7c   :  { %v53_v10 = vsel %vm41_vm0, %v51_v8, 0.0  ;;  %v71_v11 = vsel %vm41_vm0, %v69_v9, 0.0 }
  0x7d   :  { %54 = vadd.xlane.f32.xlu0 %v53_v10  ;;  %72 = vadd.xlane.f32.xlu1 %v71_v11 }
  0x7f   :  { %v60_v12 = vpop.permute.xlu0 %59 }
  0x80   :  { %v62_v13 = vsel %vm41_vm0, %v60_v12, 0.0 }
  0x81   :  { %63 = vadd.xlane.f32.xlu0 %v62_v13 }
  0xba   :  { %v44_v15 = vpop.xlane.xlu1 %43 }
  0xbb   :  { %v46_v16 = vadd.f32 %v45_v14, %v44_v15 }
  0xbd   :  { %48 = vst.msk [vmem:[%s151_s5] sm:$0xf] %vm47_vm1, %v46_v16 }
 0x10a   :  { %v55_v17 = vpop.xlane.xlu0 %54  ;;  %v73_v19 = vpop.xlane.xlu1 %72 }
 0x10b   :  { %v56_v18 = vadd.f32 %v55_v17, %v45_v14  ;;  %v74_v21 = vadd.f32 %v73_v19, %v45_v14 }
 0x10d   :  { %58 = vst.msk [vmem:[%s151_s5] sm:$0xf] %vm57_vm2, %v56_v18 }
 0x10e   :  { %v64_v20 = vpop.xlane.xlu0 %63 }
 0x10f   :  { %v65_v22 = vadd.f32 %v64_v20, %v45_v14 }
 0x111   :  { %67 = vst.msk [vmem:[%s151_s5] sm:$0xf] %vm66_vm3, %v65_v22 }
 0x112   :  { %76 = vst.msk [vmem:[%s151_s5] sm:$0xf] %vm75_vm4, %v74_v21 }

</bundles_post_ra>
